<compile_context>
chip_gen: v5e
topology: v5e:2x2
jax: 0.10.0
libtpu: 0.0.40
codegen_flags: <defaults>
</compile_context>

<pallas_src>
import functools
import math

import jax
import jax.numpy as jnp
from jax.experimental import pallas as pl
from jax.experimental.pallas import tpu as pltpu


_LANE = 128
_BN_TARGET = 32768                  # lane-axis block target (elements)
_BB_TARGET = 64                     # batch-axis block target (rows)
_VMEM_BUDGET = 24 * 1024 * 1024     # target for the double-buffered per-step working set


# -------------------------- kernels --------------------------

def _scale_kernel(x_ref, o_ref, *, inv_scale):
    # Cast to float32 inside the kernel (VPU work hidden under the DMA), then multiply by
    # the precomputed reciprocal instead of dividing (VALU instead of EUP).
    x = x_ref[...].astype(jnp.float32)
    o_ref[...] = (x * jnp.float32(inv_scale)).astype(o_ref.dtype)


def _norm_kernel(x_ref, stats_ref, o_ref):
    # stats_ref is a fused (2, bn) block: row 0 = mean, row 1 = 1/std.
    # Both broadcast over the batch rows of the block.
    x = x_ref[...].astype(jnp.float32)
    mean = stats_ref[0:1, :]
    inv_std = stats_ref[1:2, :]
    o_ref[...] = ((x - mean) * inv_std).astype(o_ref.dtype)


# -------------------------- block planning --------------------------

def _sublane_multiple(dtype):
    """Sublane packing granularity (rows per native tile) for a dtype."""
    itemsize = jnp.dtype(dtype).itemsize
    if itemsize == 1:
        return 32
    if itemsize == 2:
        return 16
    return 8


def _round_down(x, m):
    return max(m, (x // m) * m)


def _pick_block_n(N, target=_BN_TARGET):
    """Full N if it fits; otherwise the largest multiple of 128 <= target that divides N
    (keeps every output store lane-dense / unmasked); otherwise largest multiple of 128."""
    if N <= target:
        return N
    best = _round_down(target, _LANE)
    cand = best
    while cand >= _LANE:
        if N % cand == 0:
            return cand
        cand -= _LANE
    return best


def _pick_block_b(B, bn, in_itemsize, b_mult, target=_BB_TARGET, budget=_VMEM_BUDGET):
    """Full B if small; otherwise the largest dtype-aligned row count that keeps the
    double-buffered working set (in + f32 out + fused stats) within the VMEM budget."""
    stats_bytes = 2 * 8 * bn * 4                 # (2, bn) f32 pads to 8 sublanes, x2 buffers
    per_row = 2 * bn * (in_itemsize + 4)         # in + f32 out, x2 buffers
    bb_max = max(b_mult, (budget - stats_bytes) // per_row)
    bb = min(target, bb_max)
    if B <= bb:
        return B
    return _round_down(bb, b_mult)


def _sanitize_bn(bn, N):
    bn = _round_down(int(bn), _LANE)
    return N if bn >= N else bn


def _sanitize_bb(bb, B, b_mult):
    bb = _round_down(int(bb), b_mult)
    return B if bb >= B else bb


def _ensure_two_blocks(B, N, bb, bn, b_mult):
    """v7x has 2 TensorCores per chip: make sure the parallel grid has >= 2 blocks."""
    if pl.cdiv(N, bn) * pl.cdiv(B, bb) >= 2:
        return bb, bn
    if N >= 2 * _LANE:
        half = -(-((N + 1) // 2) // _LANE) * _LANE   # round half up to a multiple of 128
        return bb, min(half, bn)
    if B > b_mult:
        return _round_down((B + 1) // 2, b_mult), bn
    return bb, bn                                    # tiny input: single block is fine


def _vmem_limit_bytes(bb, bn, in_itemsize):
    est = 2 * bb * bn * (in_itemsize + 4) + 2 * 8 * bn * 4
    # Generous headroom over the estimate, but stay well below v7x's 64 MiB physical VMEM.
    return int(min(56 * 1024 * 1024, max(32 * 1024 * 1024, 2 * est)))


def _plan(img_shape, in_dtype, block_b, block_n):
    B = int(img_shape[0])
    N = int(math.prod(img_shape[1:]))
    itemsize = jnp.dtype(in_dtype).itemsize
    b_mult = _sublane_multiple(in_dtype)
    bn = _pick_block_n(N) if block_n is None else _sanitize_bn(block_n, N)
    bb = (_pick_block_b(B, bn, itemsize, b_mult) if block_b is None
          else _sanitize_bb(block_b, B, b_mult))
    bb, bn = _ensure_two_blocks(B, N, bb, bn, b_mult)
    grid = (pl.cdiv(N, bn), pl.cdiv(B, bb))   # N-tiles outer, B-tiles inner (stats resident)
    vmem = _vmem_limit_bytes(bb, bn, itemsize)
    return B, N, bb, bn, grid, vmem


# -------------------------- wrappers --------------------------

def img_preprocess_scale(img, ob_scale=255.0, block_b=None, block_n=None,
                         out_dtype=jnp.float32):
    """img: (B, C, H, W) any dtype -> out_dtype (B, C, H, W), divided by ob_scale."""
    B, N, bb, bn, grid, vmem = _plan(img.shape, img.dtype, block_b, block_n)
    x2d = img.reshape(B, N)

    out = pl.pallas_call(
        functools.partial(_scale_kernel, inv_scale=1.0 / float(ob_scale)),
        out_shape=jax.ShapeDtypeStruct((B, N), out_dtype),
        grid_spec=pltpu.PrefetchScalarGridSpec(
            num_scalar_prefetch=0,
            grid=grid,
            in_specs=[pl.BlockSpec((bb, bn), lambda n, b: (b, n))],
            out_specs=pl.BlockSpec((bb, bn), lambda n, b: (b, n)),
        ),
        compiler_params=pltpu.CompilerParams(
            dimension_semantics=("parallel", "parallel"),
            vmem_limit_bytes=vmem),
    )(x2d)
    return out.reshape(img.shape)


def img_preprocess_stats(img, img_mean, img_std, block_b=None, block_n=None,
                         out_dtype=jnp.float32):
    """img: (B, C, H, W); img_mean/img_std: (C, H, W) -> out_dtype (B, C, H, W)."""
    B, N, bb, bn, grid, vmem = _plan(img.shape, img.dtype, block_b, block_n)
    x2d = img.reshape(B, N)
    # Fuse mean and 1/std into one (2, N) array: one resident stats DMA stream instead of
    # two, and the reciprocal is computed once in the wrapper (no EUP divides in-kernel).
    stats = jnp.stack(
        [img_mean.astype(jnp.float32).reshape(N),
         (1.0 / img_std.astype(jnp.float32)).reshape(N)],
        axis=0)  # (2, N)

    out = pl.pallas_call(
        _norm_kernel,
        out_shape=jax.ShapeDtypeStruct((B, N), out_dtype),
        grid_spec=pltpu.PrefetchScalarGridSpec(
            num_scalar_prefetch=0,
            grid=grid,
            in_specs=[
                pl.BlockSpec((bb, bn), lambda n, b: (b, n)),
                # stats: block index constant across the inner batch axis -> stays resident
                pl.BlockSpec((2, bn), lambda n, b: (0, n)),
            ],
            out_specs=pl.BlockSpec((bb, bn), lambda n, b: (b, n)),
        ),
        compiler_params=pltpu.CompilerParams(
            dimension_semantics=("parallel", "parallel"),
            vmem_limit_bytes=vmem),
    )(x2d, stats)
    return out.reshape(img.shape)


# -------------------------- main --------------------------

if __name__ == "__main__":
    key = jax.random.PRNGKey(0)
    k_img, k_mean, k_std, k_img2, k_mean2, k_std2 = jax.random.split(key, 6)

    # ---- small shapes consistent with the module ----
    B, C, H, W = 2, 4, 16, 16
    img = jax.random.randint(k_img, (B, C, H, W), 0, 256, dtype=jnp.int32).astype(jnp.uint8)

    # Path 1: scale_img=True, no statistics -> x / 255.0
    out_scale = jax.block_until_ready(img_preprocess_scale(img, ob_scale=255.0))
    ref_scale = img.astype(jnp.float32) / 255.0
    assert out_scale.dtype == jnp.float32
    assert jnp.allclose(out_scale, ref_scale, atol=1e-6), "scale path mismatch"

    # Path 2: img_statistics given -> (x - mean) / std
    img_mean = jax.random.uniform(k_mean, (C, H, W), jnp.float32, 0.0, 255.0)
    img_std = jax.random.uniform(k_std, (C, H, W), jnp.float32, 1.0, 64.0)
    out_norm = jax.block_until_ready(img_preprocess_stats(img, img_mean, img_std))
    ref_norm = (img.astype(jnp.float32) - img_mean[None]) / img_std[None]
    assert out_norm.dtype == jnp.float32
    assert jnp.allclose(out_norm, ref_norm, atol=1e-4, rtol=1e-5), "stats path mismatch"

    # ---- exercise the tiled path: multi-tile 2D grid + partial trailing batch block ----
    B2, C2, H2, W2 = 40, 3, 32, 32  # N2 = 3072
    img2 = jax.random.randint(k_img2, (B2, C2, H2, W2), 0, 256, dtype=jnp.int32).astype(jnp.uint8)
    img_mean2 = jax.random.uniform(k_mean2, (C2, H2, W2), jnp.float32, 0.0, 255.0)
    img_std2 = jax.random.uniform(k_std2, (C2, H2, W2), jnp.float32, 1.0, 64.0)

    ref_norm2 = (img2.astype(jnp.float32) - img_mean2[None]) / img_std2[None]
    ref_scale2 = img2.astype(jnp.float32) / 255.0

    # Default plan (grid guard splits N so both v7x TensorCores get work).
    out_norm2 = jax.block_until_ready(img_preprocess_stats(img2, img_mean2, img_std2))
    assert jnp.allclose(out_norm2, ref_norm2, atol=1e-4, rtol=1e-5), "default stats mismatch"

    # Explicit override path: block_b=32 (uint8 tile-aligned, last batch block masked),
    # block_n=1024 -> grid (3, 2): N-tiles outer keep the stats block resident.
    out_norm3 = jax.block_until_ready(
        img_preprocess_stats(img2, img_mean2, img_std2, block_b=32, block_n=1024))
    assert jnp.allclose(out_norm3, ref_norm2, atol=1e-4, rtol=1e-5), "tiled stats mismatch"

    out_scale2 = jax.block_until_ready(
        img_preprocess_scale(img2, ob_scale=255.0, block_b=32, block_n=1024))
    assert jnp.allclose(out_scale2, ref_scale2, atol=1e-6), "tiled scale mismatch"

    # TODO(synk): out_dtype=jnp.bfloat16 would cut the dominant f32 write traffic ~40%,
    # but it changes the module's float32 output contract, so it stays opt-in.
    print("KERNEL_OK")
</pallas_src>

<mosaic_0001>
module attributes {stable_mosaic.version = 11 : i64} {
  func.func @_scale_kernel(%arg0: i32, %arg1: i32, %arg2: memref<2x512xi8, #tpu.memory_space<vmem>>, %arg3: memref<2x512xf32, #tpu.memory_space<vmem>>) attributes {dimension_semantics = [#tpu.dimension_semantics<parallel>, #tpu.dimension_semantics<parallel>], iteration_bounds = array<i64: 2, 1>, scalar_prefetch = 0 : i64, scratch_operands = 0 : i64, tpu.core_type = #tpu.core_type<tc>, window_params = [{transform_indices = @transform_0, window_bounds = array<i64: 2, 512>}, {transform_indices = @transform_1, window_bounds = array<i64: 2, 512>}]} {
    %c0 = arith.constant 0 : index
    %c0_0 = arith.constant 0 : index
    %0 = vector.load %arg2[%c0, %c0_0] : memref<2x512xi8, #tpu.memory_space<vmem>>, vector<2x512xi8>
    %1 = arith.uitofp %0 : vector<2x512xi8> to vector<2x512xf32>
    %cst = arith.constant 0.00392156886 : f32
    %2 = vector.broadcast %cst : f32 to vector<2x512xf32>
    %3 = arith.mulf %1, %2 : vector<2x512xf32>
    %c0_1 = arith.constant 0 : index
    %c0_2 = arith.constant 0 : index
    %4 = vector.load %arg3[%c0_1, %c0_2] : memref<2x512xf32, #tpu.memory_space<vmem>>, vector<2x512xf32>
    tpu.vector_store %arg3[%c0_1, %c0_2], %3 {strides = array<i32>} : memref<2x512xf32, #tpu.memory_space<vmem>>, vector<2x512xf32>,
    return
  }
  func.func @transform_0(%arg0: i32, %arg1: i32) -> (i32, i32) {
    %c0_i32 = arith.constant 0 : i32
    return %arg1, %arg0 : i32, i32
  }
  func.func @transform_1(%arg0: i32, %arg1: i32) -> (i32, i32) {
    %c0_i32 = arith.constant 0 : i32
    return %arg1, %arg0 : i32, i32
  }
}

</mosaic_0001>

<bundles_post_ra>
// kernel: tpu_custom_call.1
= control target key start
LH: loop header
LB: loop body
LE: loop exit
PB: predicated region body
PF: predicated region fallthrough
CT: control target
= control target key end

     0   :  { %6 = vsyncpa [#allocation3], 0  ;;  %s600_s0 = inlined_call_operand.hbm [shape: u8[2,1024], index: 0, kind: input, shape index: {}]   ;;  %s601_s1 = inlined_call_operand.hbm [shape: f32[2,1024], index: 1, kind: output, shape index: {}]  }
   0x1   :  { %8 = vsyncpa [#allocation3 + $0x1], 0 }
   0x2   :  { %9 = vsyncpa [#allocation4], 0 }
   0x3   :  { %11 = vsyncpa [#allocation4 + $0x1], 0  ;;  %s479_s6 = smov 0   ;;  %s481_s7 = smov 0  }
   0x4   :  { %s483_s8 = smov 0   ;;  %s485_s9 = smov 0  }
   0x5   :  { %s487_s10 = smov 0   ;;  %s489_s11 = smov 0  }
   0x6 LB: > { %s278_s12 = sadd.s32 4294967295, %s467_s11   ;;  %s279_s13 = sadd.s32 4294967294, %s467_s11   ;;  %s467_s11 = sphi %s489_s11, %s17_s11   ;;  %s463_s10 = sphi %s487_s10, %s610_s10   ;;  %s459_s9 = sphi %s485_s9, %s609_s9   ;;  %s455_s8 = sphi %s483_s8, %s608_s8   ;;  %s451_s7 = sphi %s481_s7, %s607_s7   ;;  %s447_s6 = sphi %s479_s6, %s606_s6  }
   0x7   : > { %s29_s14 = sadd.s32 1, %s463_s10  ;;  %s38_s15 = sadd.s32 1, %s455_s8 }
   0x8   : > { %p31_p0 = scmp.ge.s32.totalorder %s29_s14, 2  ;;  %p45_p1 = scmp.ne.s32.totalorder %s455_s8, %s451_s7 }
   0x9   : > { %p46_p2 = scmp.eq.s32.totalorder %s467_s11, 0  ;;  %p51_p3 = scmp.ne.s32.totalorder %s451_s7, %s447_s6 }
   0xa   : > { %s612_s14 = smov (%p31_p0, %s29_s14), 0  ;;  %p52_p5 = scmp.eq.s32.totalorder %s278_s12, 0 }
   0xb   : > { %p520_p4 = por %p46_p2, %p45_p1  ;;  %s34_s17 = ssub.s32 %s463_s10, %s612_s14 }
   0xc   : > { %p77_p6 = scmp.eq.s32.totalorder %s278_s12, 1  ;;  %p36_p7 = scmp.eq.s32.totalorder %s34_s17, 0 }
   0xd   : > { %p526_p8 = por %p52_p5, %p51_p3  ;;  %p83_p10 = scmp.eq.s32.totalorder %s279_s13, 1 }
   0xe   : > { %p530_p9 = por %p77_p6, %p45_p1  ;;  %p281_p12 = scmp.ge.s32.totalorder %s467_s11, 2 }
   0xf   : > { %s535_s20 = scalar_select %p36_p7, %s455_s8, %s38_s15  }
  0x10   : > { %p537_p11 = por %p83_p10, %p51_p3  ;;  %p305_p13 = scmp.lt.s32.totalorder %s467_s11, 2 }
  0x11   : > { %s103_s22 = sand.u32 1, %s455_s8   ;;  %s283_s24 = sshll.u32 %s463_s10, 2 }
  0x12   : > { %s282_s23 = sshll.u32 %s103_s22, 2  ;;  %s113_s27 = scalar_lea.hbm %s600_s0, %s283_s24 }
  0x13   : > { %s107_s28 = scalar_lea.vmem [#allocation2], %s282_s23  ;;  %s115_s30 = sshll.u32 %s113_s27, 4  ;;  %s116_s30 = int_to_ptr.hbm [resolvable:$true] %s115_s30 }
  0x14   : > { %s117_s29 = sshll.u32 %s107_s28, 4  ;;  %p298_p0 = pnand %p305_p13, %p520_p4  ;;  %s118_s29 = int_to_ptr.vmem [resolvable:$true] %s117_s29 }
  0x15   : > { %p284_p1 = scmp.ge.s32.totalorder %s467_s11, 1  ;;  %p122_p2 = scmp.lt.s32.totalorder %s467_s11, 3 }
  0x16   : > { %s104_s2 = scalar_lea.sflag [#allocation3], %s103_s22 }
  0x17   : > { %300 = dma.hbm_to_vmem [thread:$0]  (!%p298_p0), %s116_s30, 64, %s118_s29, %s104_s2  }
  0x18   : > { %p123_p3 = pnand %p284_p1, %p122_p2 }
  0x19   : > { %s553_s3 = sand.u32 (!%p123_p3), 1, %s451_s7  }
  0x1a   : > { %126 = sbr.rel (%p123_p3) target bundleno = 48 (0x30), region = 24  ;;  %s285_s4 = sshll.u32 (!%p123_p3), %s553_s3, 2 }
  0x1b   : > { %s129_s5 = scalar_lea.sflag (!%p123_p3), [#allocation3], %s553_s3  ;;  %s132_s12 = scalar_lea.vmem (!%p123_p3), [#allocation2], %s285_s4 }
  0x1f   : > { %438 = dma.done.wait (%p526_p8), %s129_s5, 64  }
  0x20   : > { %440 = vsyncadd (%p526_p8), %s129_s5, 4294967232  ;;  %v154_v0 = vld [vmem:[%s132_s12] sm:$0xf]  ;;  %s286_s13 = sshll.u32 %s553_s3, 3  ;;  %s292_s15 = sshll.u32 %s459_s9, 3  ;;  %vm168_vm0 = vcmask 1041408  }
  0x21   : > { %v155_v1 = vunpack.c.0.s8 %v154_v0  ;;  %v156_v2 = vunpack.c.1.s8 %v154_v0  ;;  %s190_s22 = scalar_lea.hbm %s601_s1, %s292_s15  ;;  %vm170_vm1 = vcmask 1045508   ;;  %s151_s18 = scalar_lea.vmem [#allocation5], %s286_s13  ;;  %vm172_vm2 = vcmask 1043456  }
  0x22   : > { %s192_s23 = sshll.u32 %s151_s18, 4  ;;  %s194_s24 = sshll.u32 %s190_s22, 4  ;;  %s193_s23 = int_to_ptr.vmem [resolvable:$true] %s192_s23  ;;  %s195_s24 = int_to_ptr.hbm [resolvable:$true] %s194_s24 }
  0x23   : > { %v157_v3 = vand.u32 255, %v155_v1  ;;  %v158_v4 = vand.u32 255, %v156_v2  ;;  %s177_s9 = scalar_lea.sflag [#allocation4], %s553_s3  ;;  %s399_s25 = sshra.s32 %s195_s24, 4  ;;  %s400_s25 = int_to_ptr.hbm [resolvable:$true] %s399_s25 }
  0x24   : > { %s401_s26 = scalar_lea.hbm %s400_s25, 8  ;;  %s405_s29 = scalar_lea.hbm %s601_s1, 16 }
  0x25   : > { %v159_v5 = vcvt.s32.f32 %v157_v3  ;;  %v160_v6 = vcvt.s32.f32 %v158_v4  ;;  %p402_p4 = scmp.ne.s32.totalorder %s400_s25, %s401_s26  ;;  %p406_p7 = scmp.lt.s32.totalorder %s400_s25, %s601_s1 }
  0x26   : > { %p407_p8 = scmp.lt.s32.totalorder %s405_s29, %s401_s26 }
  0x27   : > { %v161_v7 = vmul.f32 0.003921569, %v159_v5  ;;  %v162_v8 = vmul.f32 0.003921569, %v160_v6  ;;  %p403_p5 = pnand %p402_p4, %p530_p9 }
  0x28   : > { %p408_p10 = por %p407_p8, %p406_p7 }
  0x29   : > { %v165_v9 = vrot.slane %v161_v7, 2  ;;  %v166_v10 = vrot.slane %v162_v8, 4  ;;  %v167_v11 = vrot.slane %v162_v8, 6  ;;  %p404_p6 = pneg %p403_p5 }
  0x2b   : > { %v169_v12 = vsel %vm168_vm0, %v161_v7, %v165_v9  ;;  %v171_v13 = vsel %vm170_vm1, %v166_v10, %v167_v11  ;;  %p409_p13 = pnand %p408_p10, %p404_p6 }
  0x2c   : > { %v173_v14 = vsel %vm172_vm2, %v169_v12, %v171_v13 }
  0x2d   : > { %175 = vst [vmem:[%s151_s18] sm:$0xff] %v173_v14 }
  0x2e   : > { %412 = shalt.err (!%p409_p13)
}
  0x2f   : > { %295 = dma.vmem_to_hbm [thread:$0]  (%p530_p9), %s193_s23, 128, %s195_s24, %s177_s9  }
  0x30 PF: > { %s206_s3 = sand.u32 1, %s447_s6   ;;  %p302_p0 = pnand %p281_p12, %p537_p11 }
  0x31   : > { %s207_s4 = scalar_lea.sflag [#allocation4], %s206_s3 }
  0x32   : > { %p303_p1 = pneg %p302_p0 }
  0x34   : > { %442 = dma.done.wait (%p303_p1), %s207_s4, 128  }
  0x35   : > { %444 = vsyncadd (%p303_p1), %s207_s4, 4294967168  ;;  %s17_s11 = sadd.s32 1, %s467_s11   ;;  %s606_s6 = smov %s451_s7 }
  0x36   : > { %p14_p2 = scmp.ge.s32.totalorder %s17_s11, 4   ;;  %s607_s7 = smov %s455_s8 }
  0x37   : > { %s608_s8 = smov %s535_s20  ;;  %s609_s9 = smov %s463_s10 }
  0x38   : > { %s610_s10 = smov %s612_s14  ;;  %16 = sbr.rel (!%p14_p2) target bundleno = 6 (0x6), region = 69 }
  0x3d   :  { %213 = vsyncpa [#allocation3], 1 }
  0x3e   :  { %215 = vsyncpa [#allocation3 + $0x1], 1 }
  0x3f   :  { %216 = vsyncpa [#allocation4], 1 }
  0x40   :  { %218 = vsyncpa [#allocation4 + $0x1], 1 }

</bundles_post_ra>
